<compile_context>
chip_gen: v6e
topology: v6e:2x2x1
jax: 0.10.0
libtpu: 0.0.40
codegen_flags: <defaults>
</compile_context>

<pallas_src>
import functools

import jax
import jax.numpy as jnp
from jax import lax
from jax.experimental import pallas as pl
from jax.experimental.pallas import tpu as pltpu

BN_EPS = 1e-5
LANE = 128
VMEM_LIMIT = 40 * 1024 * 1024        # v7x-safe (64 MiB physical) with headroom
Y_RESIDENT_MAX = 8 * 1024 * 1024     # resident-Y budget (x2 for double buffering)


def _round_up(x, m):
    return ((x + m - 1) // m) * m


def _pad2d(x, rows, cols):
    r, c = x.shape
    return jnp.pad(x, ((0, rows - r), (0, cols - c)))


def _pick_tile_m(n_pad):
    """Largest of (512, 256, 128) dividing n_pad that still leaves >= 2 tiles, so the
    'parallel' grid axis can shard across v7x's two TensorCores."""
    for t in (512, 256, 128):
        if n_pad % t == 0 and n_pad // t >= 2:
            return t
    return 128 if n_pad % 128 == 0 else n_pad


def _pick_tile_k(seg_lens):
    """Largest K tile that divides every per-edge-type source segment (all are 128-multiples)."""
    for t in (1024, 512, 256, 128):
        if all(s % t == 0 for s in seg_lens):
            return t
    return 128


# ---------------------------- Pallas kernels ----------------------------

def feat_proj_kernel(x_ref, w_ref, o_ref):
    """Stage 1: Y = X_src @ [Wl_et1 | Wl_et2 | ...]  (project BEFORE aggregation, X read once)."""
    o_ref[...] = jnp.dot(x_ref[...], w_ref[...],
                         preferred_element_type=jnp.float32).astype(o_ref.dtype)


def hetero_sage_bn_elu_kernel(et_of_ref, a_ref, y_ref, xd_ref, wr_ref, inv_ref,
                              ss_ref, o_ref, obf_ref, acc_ref, *, y_resident, tile_k):
    """Stage 2 (fused, per destination node type):

        out = ELU( BN_eval( sum_et (1/deg_et) * C_et @ (X_src_et @ Wl_et)
                            + X_dst @ (sum_et Wr_et) + sum_et b_et ) )

    grid = (dst_tile i [parallel], K block k [arbitrary]); K is the edge-type-concatenated
    source axis.  A holds int8 edge counts; 1/deg is applied in f32 per step (selected by
    the prefetch table et_of[k]).  Biases + BatchNorm(eval) are pre-folded into ss.
    """
    k = pl.program_id(1)

    @pl.when(k == 0)
    def _():
        # Root/self term, computed once per destination tile.
        acc_ref[...] = jnp.dot(xd_ref[...], wr_ref[...],
                               preferred_element_type=jnp.float32)

    a = a_ref[...].astype(jnp.bfloat16)            # int8 edge counts -> bf16 (exact, <=127)
    if y_resident:
        off = pl.multiple_of(k * tile_k, tile_k)
        y = y_ref[pl.ds(off, tile_k), :]           # slice VMEM-resident Y
    else:
        y = y_ref[...]
    p = jnp.dot(a, y, preferred_element_type=jnp.float32)
    acc_ref[...] += p * inv_ref[0]                 # per-(edge-type, dst-row) 1/deg in f32

    @pl.when(k == pl.num_programs(1) - 1)
    def _():
        h = acc_ref[...] * ss_ref[0:1, :] + ss_ref[1:2, :]          # folded biases + BN(eval)
        out = jnp.where(h > 0, h, jnp.exp(jnp.minimum(h, 0.0)) - 1.0)  # ELU (no inf branch)
        o_ref[...] = out
        obf_ref[...] = out.astype(jnp.bfloat16)    # bf16 copy for the next layer (fused recast)


# ---------------------------- kernel wrappers ----------------------------

def feat_proj(x_pad, w_cat):
    n, f_in = x_pad.shape
    width = w_cat.shape[1]
    tile_m = _pick_tile_m(n)
    return pl.pallas_call(
        feat_proj_kernel,
        out_shape=jax.ShapeDtypeStruct((n, width), jnp.bfloat16),
        grid_spec=pltpu.PrefetchScalarGridSpec(
            num_scalar_prefetch=0,
            grid=(n // tile_m,),
            in_specs=[pl.BlockSpec((tile_m, f_in), lambda i: (i, 0)),
                      pl.BlockSpec((f_in, width), lambda i: (0, 0))],
            out_specs=pl.BlockSpec((tile_m, width), lambda i: (i, 0))),
        compiler_params=pltpu.CompilerParams(
            dimension_semantics=("parallel",),
            vmem_limit_bytes=VMEM_LIMIT),
    )(x_pad, w_cat)


def hetero_sage_layer(et_of, a_cat, y_cat, x_dst, wr_sum, inv_deg, scale_shift, *, tile_k):
    n_dst, k_cat = a_cat.shape
    f_out = y_cat.shape[1]
    f_dst = x_dst.shape[1]
    tile_m = _pick_tile_m(n_dst)
    y_resident = y_cat.size * 2 <= Y_RESIDENT_MAX        # bf16 bytes vs VMEM budget
    if y_resident:
        y_spec = pl.BlockSpec((k_cat, f_out), lambda i, k, eto: (0, 0))   # fetched once
    else:
        y_spec = pl.BlockSpec((tile_k, f_out), lambda i, k, eto: (k, 0))

    kernel = functools.partial(hetero_sage_bn_elu_kernel,
                               y_resident=y_resident, tile_k=tile_k)
    return pl.pallas_call(
        kernel,
        out_shape=(jax.ShapeDtypeStruct((n_dst, f_out), jnp.float32),
                   jax.ShapeDtypeStruct((n_dst, f_out), jnp.bfloat16)),
        grid_spec=pltpu.PrefetchScalarGridSpec(
            num_scalar_prefetch=1,
            grid=(n_dst // tile_m, k_cat // tile_k),
            in_specs=[
                pl.BlockSpec((tile_m, tile_k), lambda i, k, eto: (i, k)),          # A (int8)
                y_spec,                                                            # Y (bf16)
                pl.BlockSpec((tile_m, f_dst), lambda i, k, eto: (i, 0)),           # X_dst
                pl.BlockSpec((f_dst, f_out), lambda i, k, eto: (0, 0)),            # Wr_sum
                pl.BlockSpec((1, tile_m, 1), lambda i, k, eto: (eto[k], i, 0)),    # 1/deg
                pl.BlockSpec((2, f_out), lambda i, k, eto: (0, 0)),                # [scale;shift]
            ],
            out_specs=[pl.BlockSpec((tile_m, f_out), lambda i, k, eto: (i, 0)),
                       pl.BlockSpec((tile_m, f_out), lambda i, k, eto: (i, 0))],
            scratch_shapes=[pltpu.VMEM((tile_m, f_out), jnp.float32)]),
        compiler_params=pltpu.CompilerParams(
            dimension_semantics=("parallel", "arbitrary"),
            vmem_limit_bytes=VMEM_LIMIT),
    )(et_of, a_cat, y_cat, x_dst, wr_sum, inv_deg, scale_shift)


# ---------------------------- graph structures ----------------------------

def build_adjacency(nt, ets, edge_index_dict, n_nodes, n_pad):
    """Edge-type-concatenated int8 count matrix, per-edge-type inverse in-degree, and the
    K-block -> edge-type table for scalar prefetch.  Layer-independent (built once)."""
    n_dst = n_nodes[nt]
    n_dst_pad = n_pad[nt]
    seg_lens = [n_pad[et[0]] for et in ets]
    tile_k = _pick_tile_k(seg_lens)
    counts, invs, et_of = [], [], []
    for e, et in enumerate(ets):
        src = et[0]
        s_idx, d_idx = edge_index_dict[et][0], edge_index_dict[et][1]
        cnt = jnp.zeros((n_dst, n_nodes[src]), jnp.float32).at[d_idx, s_idx].add(1.0)
        deg = jnp.sum(cnt, axis=1, keepdims=True)
        inv = 1.0 / jnp.maximum(deg, 1.0)
        # TODO(synk): int8 caps per-pair edge multiplicity at 127 (fine for simple graphs).
        cnt8 = jnp.minimum(cnt, 127.0).astype(jnp.int8)
        counts.append(_pad2d(cnt8, n_dst_pad, n_pad[src]))
        invs.append(_pad2d(inv, n_dst_pad, 1))
        et_of.extend([e] * (n_pad[src] // tile_k))
    return dict(a_cat=jnp.concatenate(counts, axis=1),          # (n_dst_pad, K_cat) int8
                inv_deg=jnp.stack(invs, axis=0),                 # (n_et, n_dst_pad, 1) f32
                et_of=jnp.asarray(et_of, dtype=jnp.int32),       # (K_cat // tile_k,)
                tile_k=tile_k)


# ---------------------------- parameters ----------------------------

def _glorot(key, shape):
    fan_in, fan_out = shape
    lim = (6.0 / (fan_in + fan_out)) ** 0.5
    return jax.random.uniform(key, shape, jnp.float32, -lim, lim)


def init_params(key, metadata, in_dims, hidden, out, num_layers):
    node_types, edge_types = metadata
    params = []
    for layer_i in range(num_layers):
        f_out = out if layer_i == num_layers - 1 else hidden
        f_out_pad = _round_up(f_out, LANE)
        conv_p, bn_p = {}, {}
        for et in edge_types:
            src, _, dst = et
            f_src = in_dims[src] if layer_i == 0 else hidden
            f_dst = in_dims[dst] if layer_i == 0 else hidden
            key, k1, k2, k3 = jax.random.split(key, 4)
            w_l_t = _glorot(k1, (f_src, f_out))                       # lin_l weight^T
            w_r_t = _glorot(k2, (f_dst, f_out))                       # lin_r weight^T (no bias)
            b = 0.01 * jax.random.normal(k3, (f_out,), jnp.float32)   # lin_l bias
            conv_p[et] = dict(
                w_l_t_pad=_pad2d(w_l_t, _round_up(f_src, LANE), f_out_pad).astype(jnp.bfloat16),
                w_r_t=w_r_t, b=b)
        for nt in node_types:
            key, k1, k2 = jax.random.split(key, 3)
            bn_p[nt] = dict(
                gamma=1.0 + 0.1 * jax.random.normal(k1, (f_out,), jnp.float32),
                beta=0.1 * jax.random.normal(k2, (f_out,), jnp.float32),
                mean=jnp.zeros((f_out,), jnp.float32),     # running stats (eval mode)
                var=jnp.ones((f_out,), jnp.float32))
        params.append(dict(conv=conv_p, bn=bn_p, f_out=f_out))
    return params


# ---------------------------- forward ----------------------------

def hetero_gnn_encoder_forward(x_dict, edge_index_dict, params, metadata):
    node_types, edge_types = metadata
    n_nodes = {nt: x_dict[nt].shape[0] for nt in node_types}
    n_pad = {nt: _round_up(n_nodes[nt], LANE) for nt in node_types}

    xs = [x_dict]
    # nn.Dropout(p=0.5) is identity in eval mode; lane-dense 128-padded bf16 layout.
    h_pad = {nt: _pad2d(x_dict[nt], n_pad[nt],
                        _round_up(x_dict[nt].shape[1], LANE)).astype(jnp.bfloat16)
             for nt in node_types}

    adj_cache = {}

    for layer_p in params:
        f_out = layer_p['f_out']
        f_out_pad = _round_up(f_out, LANE)

        # PyG HeteroConv skips edge types whose endpoints currently have no features.
        active_ets = [et for et in edge_types
                      if et in edge_index_dict and et[0] in h_pad and et[2] in h_pad]
        dst_ets, src_ets = {}, {}
        for et in active_ets:
            dst_ets.setdefault(et[2], []).append(et)
            src_ets.setdefault(et[0], []).append(et)

        # ---- Stage 1: one projection per SOURCE node type (X read once, wide-N MXU) ----
        y_src, col_off = {}, {}
        for src, ets in src_ets.items():
            w_cat = jnp.concatenate([layer_p['conv'][et]['w_l_t_pad'] for et in ets], axis=1)
            y_src[src] = feat_proj(h_pad[src], w_cat)
            for j, et in enumerate(ets):
                col_off[et] = j * f_out_pad

        # ---- Stage 2: fused mean-agg + HeteroConv-sum + bias + BN(eval) + ELU ----
        new_h_pad, new_h = {}, {}
        for nt, ets in dst_ets.items():
            sig = (nt, tuple(ets))
            if sig not in adj_cache:
                adj_cache[sig] = build_adjacency(nt, ets, edge_index_dict, n_nodes, n_pad)
            adj = adj_cache[sig]

            # Row-concatenated projected features matching A_cat's K layout.
            if len(ets) == 1 and y_src[ets[0][0]].shape[1] == f_out_pad:
                y_cat = y_src[ets[0][0]]                     # zero-copy common case
            else:
                # TODO(synk): fuse via stage-1 out_specs row/col offsets + aliasing.
                parts = [lax.slice(y_src[et[0]], (0, col_off[et]),
                                   (n_pad[et[0]], col_off[et] + f_out_pad)) for et in ets]
                y_cat = jnp.concatenate(parts, axis=0)

            # HeteroConv 'sum' algebra + BatchNorm(eval) folding (tiny host-side math):
            #   sum_et (X_dst @ Wr_et + b_et) = X_dst @ (sum Wr) + sum b ; BN folded to FMA.
            w_r_sum = sum(layer_p['conv'][et]['w_r_t'] for et in ets)
            b_sum = sum(layer_p['conv'][et]['b'] for et in ets)
            bn = layer_p['bn'][nt]
            scale = bn['gamma'] * jax.lax.rsqrt(bn['var'] + BN_EPS)
            shift = bn['beta'] - bn['mean'] * scale + b_sum * scale
            ss = jnp.stack([jnp.pad(scale, (0, f_out_pad - f_out)),
                            jnp.pad(shift, (0, f_out_pad - f_out))], axis=0)
            wr_pad = _pad2d(w_r_sum, h_pad[nt].shape[1], f_out_pad).astype(jnp.bfloat16)

            out_f32, out_bf16 = hetero_sage_layer(
                adj['et_of'], adj['a_cat'], y_cat, h_pad[nt], wr_pad,
                adj['inv_deg'], ss, tile_k=adj['tile_k'])
            new_h_pad[nt] = out_bf16                         # feeds next layer (bf16, fused cast)
            new_h[nt] = out_f32[:n_nodes[nt], :f_out]        # unpadded f32 view for the caller
        h_pad = new_h_pad
        xs.append(new_h)
    return xs


# ---------------------------- main ----------------------------

if __name__ == "__main__":
    key = jax.random.PRNGKey(0)

    node_types = ('user', 'item')
    edge_types = (('user', 'rates', 'item'), ('item', 'rev_rates', 'user'))
    metadata = (node_types, edge_types)

    n_nodes = {'user': 8, 'item': 12}
    in_dims = {'user': 16, 'item': 24}
    hidden_channels = 32
    num_layers = 2

    key, kx_u, kx_i, ke, kp = jax.random.split(key, 5)
    x_dict = {
        'user': jax.random.normal(kx_u, (n_nodes['user'], in_dims['user']), jnp.float32),
        'item': jax.random.normal(kx_i, (n_nodes['item'], in_dims['item']), jnp.float32),
    }

    num_edges = 24
    e_src = jax.random.randint(ke, (num_edges,), 0, n_nodes['user'])
    e_dst = jax.random.randint(jax.random.fold_in(ke, 1), (num_edges,), 0, n_nodes['item'])
    edge_index_dict = {
        edge_types[0]: jnp.stack([e_src, e_dst]),   # user -> item
        edge_types[1]: jnp.stack([e_dst, e_src]),   # item -> user (reverse)
    }

    params = init_params(kp, metadata, in_dims, hidden_channels, hidden_channels, num_layers)

    xs = hetero_gnn_encoder_forward(x_dict, edge_index_dict, params, metadata)

    for d in xs:
        for v in d.values():
            jax.block_until_ready(v)

    assert len(xs) == num_layers + 1
    for nt in node_types:
        assert xs[-1][nt].shape == (n_nodes[nt], hidden_channels)
        assert bool(jnp.all(jnp.isfinite(xs[-1][nt])))

    print("KERNEL_OK")
</pallas_src>

<mosaic_0001>
module attributes {stable_mosaic.version = 11 : i64} {
  func.func @feat_proj_kernel(%arg0: i32, %arg1: memref<128x128xbf16, #tpu.memory_space<vmem>>, %arg2: memref<128x128xbf16, #tpu.memory_space<vmem>>, %arg3: memref<128x128xbf16, #tpu.memory_space<vmem>>) attributes {dimension_semantics = [#tpu.dimension_semantics<parallel>], iteration_bounds = array<i64: 1>, scalar_prefetch = 0 : i64, scratch_operands = 0 : i64, tpu.core_type = #tpu.core_type<tc>, window_params = [{transform_indices = @transform_0, window_bounds = array<i64: 128, 128>}, {pipeline_mode = #tpu.pipeline_mode<synchronous>, transform_indices = @transform_1, window_bounds = array<i64: 128, 128>}, {transform_indices = @transform_2, window_bounds = array<i64: 128, 128>}]} {
    %c0 = arith.constant 0 : index
    %c0_0 = arith.constant 0 : index
    %0 = vector.load %arg1[%c0, %c0_0] : memref<128x128xbf16, #tpu.memory_space<vmem>>, vector<128x128xbf16>
    %c0_1 = arith.constant 0 : index
    %c0_2 = arith.constant 0 : index
    %1 = vector.load %arg2[%c0_1, %c0_2] : memref<128x128xbf16, #tpu.memory_space<vmem>>, vector<128x128xbf16>
    %cst = arith.constant dense<0.000000e+00> : vector<128x128xf32>
    %2 = tpu.matmul %0, %1, %cst {dimension_numbers = #tpu.dot_dimension_numbers<[1], [0], [0], [1], [0, 0, 1, 1], [], []>} : vector<128x128xbf16>, vector<128x128xbf16>, vector<128x128xf32> -> vector<128x128xf32>
    %3 = arith.truncf %2 : vector<128x128xf32> to vector<128x128xbf16>
    %c0_3 = arith.constant 0 : index
    %c0_4 = arith.constant 0 : index
    %4 = vector.load %arg3[%c0_3, %c0_4] : memref<128x128xbf16, #tpu.memory_space<vmem>>, vector<128x128xbf16>
    tpu.vector_store %arg3[%c0_3, %c0_4], %3 {strides = array<i32>} : memref<128x128xbf16, #tpu.memory_space<vmem>>, vector<128x128xbf16>,
    return
  }
  func.func @transform_0(%arg0: i32) -> (i32, i32) {
    %c0_i32 = arith.constant 0 : i32
    %c0_i32_0 = arith.constant 0 : i32
    return %arg0, %c0_i32 : i32, i32
  }
  func.func @transform_1(%arg0: i32) -> (i32, i32) {
    %c0_i32 = arith.constant 0 : i32
    %c0_i32_0 = arith.constant 0 : i32
    %c0_i32_1 = arith.constant 0 : i32
    return %c0_i32, %c0_i32_0 : i32, i32
  }
  func.func @transform_2(%arg0: i32) -> (i32, i32) {
    %c0_i32 = arith.constant 0 : i32
    %c0_i32_0 = arith.constant 0 : i32
    return %arg0, %c0_i32 : i32, i32
  }
}

</mosaic_0001>

<bundles_post_ra>
// kernel: tpu_custom_call.1
= control target key start
LH: loop header
LB: loop body
LE: loop exit
PB: predicated region body
PF: predicated region fallthrough
CT: control target
= control target key end

     0   :  { %7 = vsyncpa [#allocation3], 0  ;;  %s648_s0 = inlined_call_operand.hbm [shape: bf16[128,128], index: 0, kind: input, shape index: {}]   ;;  %s649_s1 = inlined_call_operand.hbm [shape: bf16[128,128], index: 1, kind: input, shape index: {}]   ;;  %s650_s2 = inlined_call_operand.hbm [shape: bf16[128,128], index: 2, kind: output, shape index: {}]  }
   0x1   :  { %8 = vsyncpa [#allocation6], 0 }
   0x2   :  { %9 = vsyncpa [#allocation4], 0  ;;  %s610_s9 = smov [#allocation2]  }
   0x3   :  { %s15_s10 = sshll.u32 %s610_s9, 4  ;;  %s16_s10 = int_to_ptr.vmem [resolvable:$true] %s15_s10 }
   0x4   :  { %s552_s11 = scalar_lea.vmem %s16_s10, 1024  ;;  %p557_p1 = scmp.lt.s32.totalorder %s16_s10, %s16_s10 }
   0x5   :  { %p553_p0 = scmp.ne.s32.totalorder %s16_s10, %s552_s11  ;;  %p558_p2 = scmp.lt.s32.totalorder %s552_s11, %s552_s11 }
   0x7   :  { %p559_p3 = por %p558_p2, %p557_p1 }
   0x9   :  { %p560_p4 = pnand %p559_p3, %p553_p0 }
   0xb   :  { %563 = shalt.err (!%p560_p4)
}
   0xc   :  { %s611_s12 = smov 64   ;;  %s612_s13 = smov 4  }
   0xd   :  { %21 = dma.hbm_to_vmem [thread:$0]  %s648_s0, 1024, %s16_s10, [#allocation3], %s611_s12, %s611_s12, %s612_s13  }
   0xe   :  { %s613_s16 = smov [#allocation5]  }
   0xf   :  { %s27_s17 = sshll.u32 %s613_s16, 4  ;;  %s28_s17 = int_to_ptr.vmem [resolvable:$true] %s27_s17 }
  0x10   :  { %s572_s18 = scalar_lea.vmem %s28_s17, 1024  ;;  %p577_p6 = scmp.lt.s32.totalorder %s28_s17, %s28_s17 }
  0x11   :  { %p573_p5 = scmp.ne.s32.totalorder %s28_s17, %s572_s18  ;;  %p578_p7 = scmp.lt.s32.totalorder %s572_s18, %s572_s18 }
  0x13   :  { %p579_p8 = por %p578_p7, %p577_p6 }
  0x15   :  { %p580_p9 = pnand %p579_p8, %p573_p5 }
  0x17   :  { %583 = shalt.err (!%p580_p9)
}
  0x18   :  { %33 = dma.hbm_to_vmem [thread:$0]  %s649_s1, 1024, %s28_s17, [#allocation6], %s611_s12, %s611_s12, %s612_s13  }
  0x19   :  { %604 = dma.done.wait [#allocation3], 1024  }
  0x1a   :  { %605 = vsyncadd [#allocation3], 4294966272 }
  0x1b   :  { %606 = dma.done.wait [#allocation6], 1024  }
  0x1c   :  { %607 = vsyncadd [#allocation6], 4294966272  ;;  %v528_v0 = vld [vmem:[#allocation5 + $0x38] sm:$0xff]   ;;  %v529_v1 = vld [vmem:[#allocation5 + $0x30] sm:$0xff]   ;;  %s614_s0 = smov [#allocation7]  }
  0x1d   :  { %475 = vmatprep.subr.bf16.mxu0 %v528_v0  ;;  %507 = vmatprep.subr.bf16.mxu1 %v528_v0  ;;  %v530_v2 = vld [vmem:[#allocation5 + $0x28] sm:$0xff]   ;;  %v531_v3 = vld [vmem:[#allocation5 + $0x20] sm:$0xff]   ;;  %v532_v6 = vld [vmem:[#allocation5 + $0x18] sm:$0xff]   ;;  %s351_s1 = sshll.u32 %s614_s0, 4  ;;  %s352_s1 = int_to_ptr.vmem [resolvable:$true] %s351_s1 }
  0x1e   :  { %476 = vmatpush3.bf16.msra.mxu0 %v528_v0  ;;  %515 = vmatpush3.bf16.msra.mxu1 %v528_v0  ;;  %v536_v4 = vld [vmem:[#allocation2] sm:$0xff]   ;;  %v533_v7 = vld [vmem:[#allocation5 + $0x10] sm:$0xff]   ;;  %v534_v8 = vld [vmem:[#allocation5 + $0x8] sm:$0xff]   ;;  %s584_s21 = scalar_lea.vmem %s352_s1, 1024  ;;  %p589_p11 = scmp.lt.s32.totalorder %s352_s1, %s352_s1 }
  0x1f   :  { %477 = vmatprep.subr.bf16.mxu0 %v529_v1  ;;  %508 = vmatprep.subr.bf16.mxu1 %v529_v1  ;;  %v537_v5 = vld [vmem:[#allocation2 + $0x20] sm:$0xff]   ;;  %v538_v10 = vld [vmem:[#allocation2 + $0x8] sm:$0xff]   ;;  %v540_v12 = vld [vmem:[#allocation2 + $0x10] sm:$0xff]   ;;  %p585_p10 = scmp.ne.s32.totalorder %s352_s1, %s584_s21  ;;  %p590_p12 = scmp.lt.s32.totalorder %s584_s21, %s584_s21 }
  0x20   :  { %491 = vmatprep.mubr.bf16.mxu0 %v536_v4  ;;  %499 = vmatprep.mubr.bf16.mxu1 %v537_v5  ;;  %v535_v9 = vld [vmem:[#allocation5] sm:$0xff]   ;;  %v539_v11 = vld [vmem:[#allocation2 + $0x28] sm:$0xff]   ;;  %v541_v13 = vld [vmem:[#allocation2 + $0x30] sm:$0xff]  }
  0x21   :  { %v542_v14 = vld [vmem:[#allocation2 + $0x18] sm:$0xff]   ;;  %p591_p13 = por %p590_p12, %p589_p11 }
  0x22   :  { %478 = vmatpush3.bf16.msra.mxu0 %v529_v1  ;;  %516 = vmatpush3.bf16.msra.mxu1 %v529_v1  ;;  %v543_v15 = vld [vmem:[#allocation2 + $0x38] sm:$0xff]  }
  0x23   :  { %479 = vmatprep.subr.bf16.mxu0 %v530_v2  ;;  %509 = vmatprep.subr.bf16.mxu1 %v530_v2  ;;  %p592_p0 = pnand %p591_p13, %p585_p10 }
  0x26   :  { %480 = vmatpush3.bf16.msra.mxu0 %v530_v2  ;;  %517 = vmatpush3.bf16.msra.mxu1 %v530_v2 }
  0x27   :  { %481 = vmatprep.subr.bf16.mxu0 %v531_v3  ;;  %510 = vmatprep.subr.bf16.mxu1 %v531_v3 }
  0x2a   :  { %482 = vmatpush3.bf16.msra.mxu0 %v531_v3  ;;  %518 = vmatpush3.bf16.msra.mxu1 %v531_v3 }
  0x2b   :  { %483 = vmatprep.subr.bf16.mxu0 %v532_v6  ;;  %511 = vmatprep.subr.bf16.mxu1 %v532_v6 }
  0x2e   :  { %484 = vmatpush3.bf16.msra.mxu0 %v532_v6  ;;  %519 = vmatpush3.bf16.msra.mxu1 %v532_v6 }
  0x2f   :  { %485 = vmatprep.subr.bf16.mxu0 %v533_v7  ;;  %512 = vmatprep.subr.bf16.mxu1 %v533_v7 }
  0x32   :  { %486 = vmatpush3.bf16.msra.mxu0 %v533_v7  ;;  %520 = vmatpush3.bf16.msra.mxu1 %v533_v7 }
  0x33   :  { %487 = vmatprep.subr.bf16.mxu0 %v534_v8  ;;  %513 = vmatprep.subr.bf16.mxu1 %v534_v8 }
  0x36   :  { %488 = vmatpush3.bf16.msra.mxu0 %v534_v8  ;;  %521 = vmatpush3.bf16.msra.mxu1 %v534_v8 }
  0x37   :  { %489 = vmatprep.subr.bf16.mxu0 %v535_v9  ;;  %514 = vmatprep.subr.bf16.mxu1 %v535_v9 }
  0x3a   :  { %490 = vmatpush3.bf16.msra.mxu0 %v535_v9  ;;  %522 = vmatpush3.bf16.msra.mxu1 %v535_v9 }
  0x3d   :  { %492 = vmatmul.mubr.bf16.vlgmr.msra.gmra.mxu0 %v538_v10  ;;  %500 = vmatmul.mubr.bf16.vlgmr.msra.gmra.mxu1 %v539_v11 }
  0x3e   :  { %495 = vmatprep.mubr.bf16.mxu0 %v540_v12  ;;  %503 = vmatprep.mubr.bf16.mxu1 %v541_v13 }
  0x45   :  { %496 = vmatmul.mubr.bf16.gmra.mxu0 %v542_v14  ;;  %504 = vmatmul.mubr.bf16.gmra.mxu1 %v543_v15 }
  0xfd   :  { %v493_v16 = vpop.f32.mrf.mxu0  ;;  %v501_v17 = vpop.f32.mrf.mxu1 }
  0xff   :  { %v203_v18 = vpop.f32.mrf.mxu0  ;;  %v235_v19 = vpop.f32.mrf.mxu1 }
 0x101   :  { %v494_v20 = vpop.f32.mrf.mxu0  ;;  %v502_v21 = vpop.f32.mrf.mxu1 }
 0x102   :  { %v420_v22 = vpack.c.bf16 %v494_v20, %v493_v16  ;;  %v440_v23 = vpack.c.bf16 %v502_v21, %v501_v17 }
 0x103   :  { %v206_v24 = vpop.f32.mrf.mxu0  ;;  %v238_v25 = vpop.f32.mrf.mxu1 }
 0x104   :  { %452 = vst [vmem:[#allocation7 + $0x8] sm:$0xff] %v420_v22   ;;  %456 = vst [vmem:[#allocation7 + $0x28] sm:$0xff] %v440_v23   ;;  %v415_v26 = vpack.c.bf16 %v206_v24, %v203_v18  ;;  %v435_v27 = vpack.c.bf16 %v238_v25, %v235_v19 }
 0x105   :  { %v497_v28 = vpop.f32.mrf.mxu0  ;;  %v505_v29 = vpop.f32.mrf.mxu1 }
 0x106   :  { %416 = vst [vmem:[#allocation7] sm:$0xff] %v415_v26   ;;  %455 = vst [vmem:[#allocation7 + $0x20] sm:$0xff] %v435_v27  }
 0x107   :  { %v219_v30 = vpop.f32.mrf.mxu0  ;;  %v251_v31 = vpop.f32.mrf.mxu1 }
 0x109   :  { %v498_v32 = vpop.f32.mrf.mxu0  ;;  %v506_v33 = vpop.f32.mrf.mxu1 }
 0x10a   :  { %v430_v34 = vpack.c.bf16 %v498_v32, %v497_v28  ;;  %v450_v35 = vpack.c.bf16 %v506_v33, %v505_v29 }
 0x10b   :  { %v222_v36 = vpop.f32.mrf.mxu0  ;;  %v254_v37 = vpop.f32.mrf.mxu1 }
 0x10c   :  { %454 = vst [vmem:[#allocation7 + $0x18] sm:$0xff] %v430_v34   ;;  %458 = vst [vmem:[#allocation7 + $0x38] sm:$0xff] %v450_v35   ;;  %v425_v38 = vpack.c.bf16 %v222_v36, %v219_v30  ;;  %v445_v39 = vpack.c.bf16 %v254_v37, %v251_v31 }
 0x10e   :  { %453 = vst [vmem:[#allocation7 + $0x10] sm:$0xff] %v425_v38   ;;  %457 = vst [vmem:[#allocation7 + $0x30] sm:$0xff] %v445_v39  }
 0x10f   :  { %595 = shalt.err (!%p592_p0)
}
 0x110   :  { %357 = dma.vmem_to_hbm [thread:$0]  %s352_s1, 1024, %s650_s2, [#allocation4], %s611_s12, %s611_s12, %s612_s13  }
 0x111   :  { %608 = dma.done.wait [#allocation4], 1024  }
 0x112   :  { %609 = vsyncadd [#allocation4], 4294966272 }
 0x113   :  { %361 = vsyncpa [#allocation3], 1 }
 0x114   :  { %362 = vsyncpa [#allocation6], 1 }
 0x115   :  { %363 = vsyncpa [#allocation4], 1 }

</bundles_post_ra>
